<compile_context>
chip_gen: v5e
topology: v5e:2x2
jax: 0.10.0
libtpu: 0.0.40
codegen_flags: <defaults>
</compile_context>

<pallas_src>
import math

import jax
import jax.numpy as jnp
from jax.experimental import pallas as pl
from jax.experimental.pallas import tpu as pltpu


# --------------------------- hardware-aware sizing ----------------------------

def _vmem_capacity_bytes():
    try:
        return int(pltpu.get_tpu_info().vmem_capacity_bytes)
    except Exception:
        return 64 * 1024 * 1024          # conservative default (v7x per-core VMEM)


def _budgets():
    cap = _vmem_capacity_bytes()
    # Single-buffer budget for one grid step's blocks.  BlockSpec double
    # buffers, so the pipelined footprint is ~2x this plus resident operands;
    # keep it comfortably inside per-generation VMEM (v5e/v6e 128 MiB, v7x 64).
    single = min(int(cap * 0.18), 24 * 1024 * 1024)
    vmem_limit = min(int(cap * 0.75), 96 * 1024 * 1024)
    return single, vmem_limit, cap


# ----------------------------- kernel 1: 1x1 conv -----------------------------
# Used only for the top_layer path (no upsample to fuse with).

def _conv1x1_kernel(x_ref, w_ref, b_ref, o_ref):
    # x_ref (1, Cin, tS), w_ref (Cout, Cin), b_ref (Cout, 1) -> o_ref (1, Cout, tS)
    acc = jnp.dot(w_ref[...], x_ref[0], preferred_element_type=jnp.float32)
    acc = acc + b_ref[...].astype(jnp.float32)
    o_ref[0] = acc.astype(o_ref.dtype)


def _plan_conv(n, cin, cout, s, itemsize, budget):
    resident = (cout * cin + cout) * itemsize          # weight + bias stay resident
    avail = max(budget - resident, 128 * (cin + cout) * itemsize)
    cap = max(128, (avail // ((cin + cout) * itemsize) // 128) * 128)
    ts = s if s <= cap else cap                        # 128-multiple or full dim
    # v7x has 2 TensorCores: keep >= 2 parallel grid steps when possible.
    if n * pl.cdiv(s, ts) < 2 and s >= 256:
        ts = max(128, ((s // 2) // 128) * 128)
    return ts


def conv1x1(x, w, b):
    """Pointwise conv: x (N,Cin,H,W), w (Cout,Cin), b (Cout,) -> (N,Cout,H,W)."""
    n, cin, h, wd = x.shape
    cout = w.shape[0]
    s = h * wd
    budget, vmem_limit, _ = _budgets()
    ts = _plan_conv(n, cin, cout, s, x.dtype.itemsize, budget)

    x2 = x.reshape(n, cin, s)                          # trailing-dim merge: free
    b2 = b.reshape(cout, 1)
    grid = (n, pl.cdiv(s, ts))
    out = pl.pallas_call(
        _conv1x1_kernel,
        out_shape=jax.ShapeDtypeStruct((n, cout, s), x.dtype),
        grid_spec=pl.GridSpec(
            grid=grid,
            in_specs=[
                pl.BlockSpec((1, cin, ts), lambda i, j: (i, 0, j)),
                pl.BlockSpec((cout, cin), lambda i, j: (0, 0)),
                pl.BlockSpec((cout, 1), lambda i, j: (0, 0)),
            ],
            out_specs=pl.BlockSpec((1, cout, ts), lambda i, j: (i, 0, j)),
        ),
        compiler_params=pltpu.CompilerParams(
            dimension_semantics=("parallel", "parallel"),
            vmem_limit_bytes=vmem_limit),
    )(x2, w, b2)
    return out.reshape(n, cout, h, wd)


# ------------- kernel 2: fused (1x1 conv of skip) + nearest-2x add -------------

def _make_fused_kernel(tg, lane_in, lane_out):
    def kernel(x_ref, skip_ref, w_ref, b_ref, m_ref, o_ref):
        # x_ref    (1, tCo, tg*lane_in)   top-down feature (flattened, small map)
        # skip_ref (1, Cin, tg*lane_out)  lateral feature (flattened, big map)
        # w_ref    (tCo, Cin), b_ref (tCo, 1)
        # m_ref    (lane_in, lane_out)    exact 0/1 nearest-2x matrix
        # o_ref    (1, tCo, tg*lane_out)
        w = w_ref[...]
        b = b_ref[...].astype(jnp.float32)
        m = m_ref[...]
        # Static unroll over the band's grouped rows.  Per row:
        #   lat = 1x1 conv of the skip row-group   (MXU, K=Cin, N=lane_out lanes)
        #   up  = nearest-2x upsample of the matching x row-group as a single
        #         exact 0/1 matmul (row + column duplication folded into m)
        for t in range(tg):
            lo, hi = t * lane_out, (t + 1) * lane_out
            lat = jnp.dot(w, skip_ref[0, :, lo:hi],
                          preferred_element_type=jnp.float32)
            up = jnp.dot(x_ref[0, :, t * lane_in:(t + 1) * lane_in], m,
                         preferred_element_type=jnp.float32)
            o_ref[0, :, lo:hi] = (lat + b + up).astype(o_ref.dtype)
    return kernel


def _plan_fused(n, cin, cout, h, w_small, itemsize, budget, vmem_cap,
                *, target_lanes=512, max_unroll=32):
    ws = 2 * w_small
    ss = 4 * h * w_small

    # Row grouping: pack g big rows (= g//2 small rows) into one lane-dense
    # "grouped row" of lane_out = g*2W lanes (>= ~512 when the level allows).
    g = 2
    while g * ws < target_lanes and h % g == 0:
        g *= 2
    lane_out = g * ws
    lane_in = (g // 2) * w_small
    r = ss // lane_out                          # grouped rows per image

    # Smallest band size (multiple of 8 grouped rows) whose block lane extents
    # (tg*lane_in, tg*lane_out) are multiples of 128.
    tg0 = 8 * (16 // math.gcd(lane_in, 16))

    resident = (cout * cin + cout + lane_in * lane_out) * itemsize    # w + b + m
    per_row = (cin * lane_out + cout * lane_in + cout * lane_out) * itemsize
    avail = max(budget - resident, per_row)
    tg_budget = max(1, int(avail // per_row))

    if (r <= tg_budget and r <= max_unroll) or tg0 > min(r, max_unroll):
        tg = r          # whole image per band -> full-dim (always legal) blocks
    else:
        tg = min(tg_budget, r, max_unroll)
        tg = max(tg0, (tg // tg0) * tg0)

    tco = cout

    def footprint(tg_, tco_):
        blocks = (cin * lane_out + tco_ * lane_in + tco_ * lane_out) * itemsize * tg_
        return 2 * blocks + resident + 2 * tco_ * lane_out * 4

    # Keep the double-buffered footprint well inside physical VMEM (v7x: 64 MiB).
    while footprint(tg, tco) > 0.6 * vmem_cap:
        if tg >= 2 * tg0:
            tg = max(tg0, ((tg // 2) // tg0) * tg0)
        elif tg > tg0 and tg0 <= r:
            tg = tg0
        elif tco >= 16 and (tco // 2) % 8 == 0:
            tco //= 2
        else:
            # TODO(synk): for extreme (Cin x spatial) skip tensors, add a
            # reduction grid axis over Cin instead of one huge Cin block.
            break

    # v7x has 2 TensorCores: make sure the parallel grid has >= 2 steps.
    if n * pl.cdiv(cout, tco) * pl.cdiv(r, tg) < 2:
        if tco == cout and cout >= 16 and (cout // 2) % 8 == 0:
            tco = cout // 2
        elif tg > tg0 and r > tg0:
            tg = max(tg0, ((tg // 2) // tg0) * tg0)

    return g, lane_out, lane_in, tg, tco


def fused_upsample_add_conv(x, skip, w, b):
    """out = nearest_upsample_2x(x) + conv1x1(skip).

    x (N, Cout, H, W), skip (N, Cin, 2H, 2W), w (Cout, Cin), b (Cout,).
    """
    n, cout, h, wsm = x.shape
    cin = skip.shape[1]
    hs, wss = 2 * h, 2 * wsm
    assert skip.shape == (n, cin, hs, wss)

    budget, vmem_limit, cap = _budgets()
    g, lane_out, lane_in, tg, tco = _plan_fused(
        n, cin, cout, h, wsm, x.dtype.itemsize, budget, cap)
    ss, sx = hs * wss, h * wsm
    r = ss // lane_out
    ts_big, ts_sml = tg * lane_out, tg * lane_in

    x_f = x.reshape(n, cout, sx)                # trailing-dim merges: free
    skip_f = skip.reshape(n, cin, ss)
    b2 = b.reshape(cout, 1)

    # Exact 0/1 nearest-neighbour matrix: one lane-row of g big rows
    # (lane_out lanes) gathers from one lane-row of g//2 small rows
    # (lane_in lanes).  Row and column duplication are both folded in, so one
    # small matmul per grouped row performs the whole 2x upsample exactly
    # (stays exact in bf16 too, since every output selects a single input).
    p = jnp.arange(lane_out)
    src = (p // wss // 2) * wsm + (p % wss) // 2
    m = (jnp.arange(lane_in)[:, None] == src[None, :]).astype(x.dtype)

    grid = (n, pl.cdiv(cout, tco), pl.cdiv(r, tg))
    # NOTE: x is 1/4 of skip/out traffic; pipeline_mode=pl.Buffered(3) on its
    # BlockSpec is a possible minor win to sweep later.
    out = pl.pallas_call(
        _make_fused_kernel(tg, lane_in, lane_out),
        out_shape=jax.ShapeDtypeStruct((n, cout, ss), x.dtype),
        grid_spec=pl.GridSpec(
            grid=grid,
            in_specs=[
                pl.BlockSpec((1, tco, ts_sml), lambda i, j, k: (i, j, k)),
                pl.BlockSpec((1, cin, ts_big), lambda i, j, k: (i, 0, k)),
                pl.BlockSpec((tco, cin), lambda i, j, k: (j, 0)),
                pl.BlockSpec((tco, 1), lambda i, j, k: (j, 0)),
                pl.BlockSpec((lane_in, lane_out), lambda i, j, k: (0, 0)),
            ],
            out_specs=pl.BlockSpec((1, tco, ts_big), lambda i, j, k: (i, j, k)),
        ),
        compiler_params=pltpu.CompilerParams(
            dimension_semantics=("parallel", "parallel", "parallel"),
            vmem_limit_bytes=vmem_limit),
    )(x_f, skip_f, w, b2, m)
    return out.reshape(n, cout, hs, wss)


# ------------------------------- FPNBlock forward ------------------------------

def fpn_block_forward(x, skip, skip_conv_w, skip_conv_b, *, top_layer=False):
    """Pallas forward of FPNBlock.

    top_layer:  skip_conv(x)
    otherwise:  nearest_upsample_2x(x) + skip_conv(skip)
    skip_conv_w: (pyramid_channels, in_channels) or PyTorch (Cout, Cin, 1, 1)
    skip_conv_b: (pyramid_channels,)
    """
    w = skip_conv_w
    if w.ndim == 4:                                   # accept PyTorch conv layout
        w = w.reshape(w.shape[0], w.shape[1])
    if top_layer:
        return conv1x1(x, w, skip_conv_b)
    return fused_upsample_add_conv(x, skip, w, skip_conv_b)


def fpn_block_reference(x, skip, conv_w, conv_b, *, top_layer=False):
    def conv(t):
        return jnp.einsum('oc,nchw->nohw', conv_w, t) + conv_b[None, :, None, None]
    if top_layer:
        return conv(x)
    x_up = jnp.repeat(jnp.repeat(x, 2, axis=2), 2, axis=3)
    return x_up + conv(skip)


if __name__ == "__main__":
    key = jax.random.PRNGKey(0)
    k_x, k_skip, k_w, k_b, k_xtop = jax.random.split(key, 5)

    # Small FPN-like shapes: pyramid_channels=8, skip_channels=4,
    # top-down feature 16x16, skip feature 32x32.
    n, c_pyr, c_skip, h, w = 2, 8, 4, 16, 16
    x = jax.random.normal(k_x, (n, c_pyr, h, w), dtype=jnp.float32)
    skip = jax.random.normal(k_skip, (n, c_skip, 2 * h, 2 * w), dtype=jnp.float32)
    conv_w = jax.random.normal(k_w, (c_pyr, c_skip), dtype=jnp.float32) * 0.25
    conv_b = jax.random.normal(k_b, (c_pyr,), dtype=jnp.float32) * 0.1

    # default path: upsample(x) + skip_conv(skip), fused in one kernel
    out = jax.block_until_ready(
        fpn_block_forward(x, skip, conv_w, conv_b, top_layer=False))
    ref = fpn_block_reference(x, skip, conv_w, conv_b, top_layer=False)
    assert out.shape == (n, c_pyr, 2 * h, 2 * w) and out.dtype == x.dtype
    assert jnp.allclose(out, ref, atol=1e-4, rtol=1e-4), \
        float(jnp.max(jnp.abs(out - ref)))

    # top-layer path: skip_conv(x)  (x has skip_channels channels here)
    x_top = jax.random.normal(k_xtop, (n, c_skip, h, w), dtype=jnp.float32)
    out_top = jax.block_until_ready(
        fpn_block_forward(x_top, None, conv_w, conv_b, top_layer=True))
    ref_top = fpn_block_reference(x_top, None, conv_w, conv_b, top_layer=True)
    assert out_top.shape == (n, c_pyr, h, w)
    assert jnp.allclose(out_top, ref_top, atol=1e-4, rtol=1e-4)

    print("KERNEL_OK")
</pallas_src>

<mosaic_0001>
module attributes {stable_mosaic.version = 11 : i64} {
  func.func @kernel(%arg0: i32, %arg1: i32, %arg2: i32, %arg3: memref<1x8x256xf32, #tpu.memory_space<vmem>>, %arg4: memref<1x4x1024xf32, #tpu.memory_space<vmem>>, %arg5: memref<8x4xf32, #tpu.memory_space<vmem>>, %arg6: memref<8x1xf32, #tpu.memory_space<vmem>>, %arg7: memref<128x512xf32, #tpu.memory_space<vmem>>, %arg8: memref<1x8x1024xf32, #tpu.memory_space<vmem>>) attributes {dimension_semantics = [#tpu.dimension_semantics<parallel>, #tpu.dimension_semantics<parallel>, #tpu.dimension_semantics<parallel>], iteration_bounds = array<i64: 2, 1, 1>, scalar_prefetch = 0 : i64, scratch_operands = 0 : i64, tpu.core_type = #tpu.core_type<tc>, window_params = [{transform_indices = @transform_0, window_bounds = array<i64: 1, 8, 256>}, {transform_indices = @transform_1, window_bounds = array<i64: 1, 4, 1024>}, {transform_indices = @transform_2, window_bounds = array<i64: 8, 4>}, {transform_indices = @transform_3, window_bounds = array<i64: 8, 1>}, {pipeline_mode = #tpu.pipeline_mode<synchronous>, transform_indices = @transform_4, window_bounds = array<i64: 128, 512>}, {transform_indices = @transform_5, window_bounds = array<i64: 1, 8, 1024>}]} {
    %c0 = arith.constant 0 : index
    %c0_0 = arith.constant 0 : index
    %0 = vector.load %arg5[%c0, %c0_0] : memref<8x4xf32, #tpu.memory_space<vmem>>, vector<8x4xf32>
    %c0_1 = arith.constant 0 : index
    %c0_2 = arith.constant 0 : index
    %1 = vector.load %arg6[%c0_1, %c0_2] : memref<8x1xf32, #tpu.memory_space<vmem>>, vector<8x1xf32>
    %c0_3 = arith.constant 0 : index
    %c0_4 = arith.constant 0 : index
    %2 = vector.load %arg7[%c0_3, %c0_4] : memref<128x512xf32, #tpu.memory_space<vmem>>, vector<128x512xf32>
    %c0_5 = arith.constant 0 : index
    %c0_6 = arith.constant 0 : index
    %c0_7 = arith.constant 0 : index
    %3 = vector.load %arg4[%c0_5, %c0_6, %c0_7] : memref<1x4x1024xf32, #tpu.memory_space<vmem>>, vector<1x4x512xf32>
    %4 = vector.shape_cast %3 : vector<1x4x512xf32> to vector<4x512xf32>
    %cst = arith.constant dense<0.000000e+00> : vector<8x512xf32>
    %5 = tpu.matmul %0, %4, %cst {dimension_numbers = #tpu.dot_dimension_numbers<[1], [0], [0], [1], [0, 0, 1, 1], [], []>} : vector<8x4xf32>, vector<4x512xf32>, vector<8x512xf32> -> vector<8x512xf32>
    %c0_8 = arith.constant 0 : index
    %c0_9 = arith.constant 0 : index
    %c0_10 = arith.constant 0 : index
    %6 = vector.load %arg3[%c0_8, %c0_9, %c0_10] : memref<1x8x256xf32, #tpu.memory_space<vmem>>, vector<1x8x128xf32>
    %7 = vector.shape_cast %6 : vector<1x8x128xf32> to vector<8x128xf32>
    %cst_11 = arith.constant dense<0.000000e+00> : vector<8x512xf32>
    %8 = tpu.matmul %7, %2, %cst_11 {dimension_numbers = #tpu.dot_dimension_numbers<[1], [0], [0], [1], [0, 0, 1, 1], [], []>} : vector<8x128xf32>, vector<128x512xf32>, vector<8x512xf32> -> vector<8x512xf32>
    %9 = vector.broadcast %1 : vector<8x1xf32> to vector<8x512xf32>
    %10 = arith.addf %5, %9 : vector<8x512xf32>
    %11 = arith.addf %10, %8 : vector<8x512xf32>
    %c0_12 = arith.constant 0 : index
    %c0_13 = arith.constant 0 : index
    %c0_14 = arith.constant 0 : index
    %12 = vector.load %arg8[%c0_12, %c0_13, %c0_14] : memref<1x8x1024xf32, #tpu.memory_space<vmem>>, vector<1x8x512xf32>
    %13 = vector.shape_cast %12 : vector<1x8x512xf32> to vector<8x512xf32>
    %14 = vector.shape_cast %11 : vector<8x512xf32> to vector<1x8x512xf32>
    tpu.vector_store %arg8[%c0_12, %c0_13, %c0_14], %14 {strides = array<i32>} : memref<1x8x1024xf32, #tpu.memory_space<vmem>>, vector<1x8x512xf32>,
    %c0_15 = arith.constant 0 : index
    %c0_16 = arith.constant 0 : index
    %c512 = arith.constant 512 : index
    %15 = vector.load %arg4[%c0_15, %c0_16, %c512] : memref<1x4x1024xf32, #tpu.memory_space<vmem>>, vector<1x4x512xf32>
    %16 = vector.shape_cast %15 : vector<1x4x512xf32> to vector<4x512xf32>
    %cst_17 = arith.constant dense<0.000000e+00> : vector<8x512xf32>
    %17 = tpu.matmul %0, %16, %cst_17 {dimension_numbers = #tpu.dot_dimension_numbers<[1], [0], [0], [1], [0, 0, 1, 1], [], []>} : vector<8x4xf32>, vector<4x512xf32>, vector<8x512xf32> -> vector<8x512xf32>
    %c0_18 = arith.constant 0 : index
    %c0_19 = arith.constant 0 : index
    %c128 = arith.constant 128 : index
    %18 = vector.load %arg3[%c0_18, %c0_19, %c128] : memref<1x8x256xf32, #tpu.memory_space<vmem>>, vector<1x8x128xf32>
    %19 = vector.shape_cast %18 : vector<1x8x128xf32> to vector<8x128xf32>
    %cst_20 = arith.constant dense<0.000000e+00> : vector<8x512xf32>
    %20 = tpu.matmul %19, %2, %cst_20 {dimension_numbers = #tpu.dot_dimension_numbers<[1], [0], [0], [1], [0, 0, 1, 1], [], []>} : vector<8x128xf32>, vector<128x512xf32>, vector<8x512xf32> -> vector<8x512xf32>
    %21 = vector.broadcast %1 : vector<8x1xf32> to vector<8x512xf32>
    %22 = arith.addf %17, %21 : vector<8x512xf32>
    %23 = arith.addf %22, %20 : vector<8x512xf32>
    %c0_21 = arith.constant 0 : index
    %c0_22 = arith.constant 0 : index
    %c512_23 = arith.constant 512 : index
    %24 = vector.load %arg8[%c0_21, %c0_22, %c512_23] : memref<1x8x1024xf32, #tpu.memory_space<vmem>>, vector<1x8x512xf32>
    %25 = vector.shape_cast %24 : vector<1x8x512xf32> to vector<8x512xf32>
    %26 = vector.shape_cast %23 : vector<8x512xf32> to vector<1x8x512xf32>
    tpu.vector_store %arg8[%c0_21, %c0_22, %c512_23], %26 {strides = array<i32>} : memref<1x8x1024xf32, #tpu.memory_space<vmem>>, vector<1x8x512xf32>,
    return
  }
  func.func @transform_0(%arg0: i32, %arg1: i32, %arg2: i32) -> (i32, i32, i32) {
    %c0_i32 = arith.constant 0 : i32
    return %arg0, %arg1, %arg2 : i32, i32, i32
  }
  func.func @transform_1(%arg0: i32, %arg1: i32, %arg2: i32) -> (i32, i32, i32) {
    %c0_i32 = arith.constant 0 : i32
    %c0_i32_0 = arith.constant 0 : i32
    return %arg0, %c0_i32, %arg2 : i32, i32, i32
  }
  func.func @transform_2(%arg0: i32, %arg1: i32, %arg2: i32) -> (i32, i32) {
    %c0_i32 = arith.constant 0 : i32
    %c0_i32_0 = arith.constant 0 : i32
    return %arg1, %c0_i32 : i32, i32
  }
  func.func @transform_3(%arg0: i32, %arg1: i32, %arg2: i32) -> (i32, i32) {
    %c0_i32 = arith.constant 0 : i32
    %c0_i32_0 = arith.constant 0 : i32
    return %arg1, %c0_i32 : i32, i32
  }
  func.func @transform_4(%arg0: i32, %arg1: i32, %arg2: i32) -> (i32, i32) {
    %c0_i32 = arith.constant 0 : i32
    %c0_i32_0 = arith.constant 0 : i32
    %c0_i32_1 = arith.constant 0 : i32
    return %c0_i32, %c0_i32_0 : i32, i32
  }
  func.func @transform_5(%arg0: i32, %arg1: i32, %arg2: i32) -> (i32, i32, i32) {
    %c0_i32 = arith.constant 0 : i32
    return %arg0, %arg1, %arg2 : i32, i32, i32
  }
}

</mosaic_0001>

<bundles_post_ra>
// kernel: tpu_custom_call.1
= control target key start
LH: loop header
LB: loop body
LE: loop exit
PB: predicated region body
PF: predicated region fallthrough
CT: control target
= control target key end

     0   :  { %s1804_s0 = inlined_call_operand.hbm [shape: f32[2,8,256], index: 0, kind: input, shape index: {}]   ;;  %s1805_s1 = inlined_call_operand.hbm [shape: f32[2,4,1024], index: 1, kind: input, shape index: {}]   ;;  %s1806_s2 = inlined_call_operand.vmem [shape: f32[8,4], index: 2, kind: input, shape index: {}]   ;;  %s1807_s3 = inlined_call_operand.vmem [shape: f32[8,1], index: 3, kind: input, shape index: {}]   ;;  %s1808_s4 = inlined_call_operand.hbm [shape: f32[128,512], index: 4, kind: input, shape index: {}]   ;;  %s1809_s5 = inlined_call_operand.hbm [shape: f32[2,8,1024], index: 5, kind: output, shape index: {}]  }
   0x1   :  { %1823 = sst [smem:[#allocation26_spill]] %s1808_s4 }
   0x2   :  { %10 = vsyncpa [#allocation3], 0 }
   0x3   :  { %12 = vsyncpa [#allocation3 + $0x1], 0 }
   0x4   :  { %13 = vsyncpa [#allocation6], 0 }
   0x5   :  { %15 = vsyncpa [#allocation6 + $0x1], 0 }
   0x6   :  { %16 = vsyncpa [#allocation4], 0 }
   0x7   :  { %18 = vsyncpa [#allocation4 + $0x1], 0  ;;  %s1340_s18 = smov 0   ;;  %s1342_s19 = smov 0  }
   0x8   :  { %s1344_s20 = smov 0   ;;  %s1346_s21 = smov 0  }
   0x9   :  { %s1348_s22 = smov 0   ;;  %s1350_s23 = smov 0  }
   0xa LB: > { %1824 = sst [smem:[#allocation13_spill]] %s1284_s18  ;;  %s1371_s24 = sadd.s32 4294967295, %s1304_s23   ;;  %s1304_s23 = sphi %s1350_s23, %s24_s23   ;;  %s1300_s22 = sphi %s1348_s22, %s1859_s22   ;;  %s1296_s21 = sphi %s1346_s21, %s1858_s21   ;;  %s1292_s20 = sphi %s1344_s20, %s1854_s20   ;;  %s1288_s19 = sphi %s1342_s19, %s1857_s19   ;;  %s1284_s18 = sphi %s1340_s18, %s1856_s18  }
   0xb   : > { %1825 = sst [smem:[#allocation14_spill]] %s1292_s20  ;;  %p1002_p0 = scmp.ge.s32.totalorder %s1304_s23, 1 }
   0xc   : > { %p68_p1 = scmp.eq.s32.totalorder %s1371_s24, 0  ;;  %p209_p2 = scmp.lt.s32.totalorder %s1304_s23, 3 }
   0xd   : > { %s1826_s4 = sld [smem:[#allocation26_spill]]  ;;  %s1306_s29 = smov [#allocation7]  }
   0xe   : > { %p1379_p3 = pnand %p1002_p0, %p209_p2  ;;  %s236_s30 = sshll.u32 %s1306_s29, 4  ;;  %s237_s30 = int_to_ptr.vmem [resolvable:$true] %s236_s30 }
   0xf   : > { %p1006_p6 = scmp.ge.s32.totalorder %s1304_s23, 2  ;;  %s1307_s6 = smov 512  }
  0x10   : > { %p1052_p4 = pneg %p1379_p3  ;;  %s1308_s7 = smov 32  }
  0x11   : > { %s1001_s8 = sadd.s32 4294967294, %s1304_s23   ;;  %s43_s9 = sadd.s32 1, %s1300_s22 }
  0x12   : > { %p1053_p5 = pnand %p1052_p4, %p68_p1  ;;  %s54_s10 = sadd.s32 1, %s1292_s20 }
  0x13   : > { %s234_s27 = sshll.u32 %s1826_s4, 4  ;;  %p45_p7 = scmp.ge.s32.totalorder %s43_s9, 2  ;;  %s235_s27 = int_to_ptr.hbm [resolvable:$true] %s234_s27 }
  0x14   : > { %1055 = dma.hbm_to_vmem [thread:$0]  (!%p1053_p5), %s235_s27, 8192, %s237_s30, [#allocation6], %s1307_s6, %s1307_s6, %s1308_s7  }
  0x15   : > { %p61_p8 = scmp.ne.s32.totalorder %s1292_s20, %s1288_s19  ;;  %p62_p9 = scmp.eq.s32.totalorder %s1304_s23, 0 }
  0x16   : > { %p67_p10 = scmp.ne.s32.totalorder %s1288_s19, %s1284_s18  ;;  %s1861_s9 = smov (%p45_p7, %s43_s9), 0 }
  0x17   : > { %1828 = sst [smem:[#allocation15_spill]] %s1861_s9  ;;  %p1398_p11 = por %p62_p9, %p61_p8 }
  0x18   : > { %p1404_p12 = por %p68_p1, %p67_p10  ;;  %s47_s13 = ssub.s32 %s1300_s22, %s1861_s9 }
  0x19   : > { %p196_p13 = scmp.eq.s32.totalorder %s1371_s24, 1  ;;  %p52_p0 = scmp.eq.s32.totalorder %s47_s13, 0 }
  0x1a   : > { %p202_p2 = scmp.eq.s32.totalorder %s1001_s8, 1  ;;  %p1068_p5 = scmp.lt.s32.totalorder %s1304_s23, 2 }
  0x1b   : > { %p1411_p4 = por %p196_p13, %p61_p8  ;;  %s250_s17 = sand.u32 1, %s1292_s20  }
  0x1c   : > { %s1417_s15 = scalar_select %p52_p0, %s1292_s20, %s54_s10  }
  0x1d   : > { %s1831_s14 = scalar_select %p1411_p4, 1, 0 }
  0x1e   : > { %1833 = sst [smem:[#allocation17_spill]] %s1417_s15  ;;  %p1419_p7 = por %p202_p2, %p67_p10 }
  0x1f   : > { %1832 = sst [smem:[#allocation16_spill]] %s1831_s14  ;;  %s1007_s25 = sshll.u32 %s250_s17, 4 }
  0x20   : > { %s1834_s16 = scalar_select %p1419_p7, 1, 0 }
  0x21   : > { %s1039_s26 = sshll.u32 %s1300_s22, 4  ;;  %s254_s6 = scalar_lea.vmem [#allocation2], %s1007_s25 }
  0x22   : > { %1835 = sst [smem:[#allocation18_spill]] %s1834_s16  ;;  %s263_s30 = scalar_lea.hbm %s1804_s0, %s1039_s26 }
  0x23   : > { %s267_s7 = sshll.u32 %s254_s6, 4  ;;  %s265_s8 = sshll.u32 %s263_s30, 4  ;;  %s268_s7 = int_to_ptr.vmem [resolvable:$true] %s267_s7  ;;  %s266_s8 = int_to_ptr.hbm [resolvable:$true] %s265_s8 }
  0x24   : > { %p1057_p8 = pnand %p1068_p5, %p1398_p11  ;;  %s274_s10 = sand.u32 1, %s1304_s23  }
  0x25   : > { %s1010_s13 = sshll.u32 %s250_s17, 5  ;;  %s251_s4 = scalar_lea.sflag [#allocation3], %s250_s17 }
  0x26   : > { %1059 = dma.hbm_to_vmem [thread:$0]  (!%p1057_p8), %s266_s8, 256, %s268_s7, %s251_s4  }
  0x27   : > { %s1040_s9 = sshll.u32 %s1300_s22, 5  ;;  %s278_s18 = scalar_lea.vmem [#allocation5], %s1010_s13 }
  0x28   : > { %s285_s16 = scalar_lea.hbm %s1805_s1, %s1040_s9  ;;  %s289_s14 = sshll.u32 %s278_s18, 4  ;;  %s290_s14 = int_to_ptr.vmem [resolvable:$true] %s289_s14 }
  0x29   : > { %s287_s27 = sshll.u32 %s285_s16, 4  ;;  %s275_s25 = scalar_lea.sflag [#allocation6], %s274_s10  ;;  %s288_s27 = int_to_ptr.hbm [resolvable:$true] %s287_s27 }
  0x2a   : > { %1062 = dma.hbm_to_vmem [thread:$0]  (!%p1057_p8), %s288_s27, 512, %s290_s14, %s275_s25  }
  0x2b   : > { %298 = sbr.rel (%p1379_p3) target bundleno = 278 (0x116), region = 40 }
  0x30   : > { %s1438_s11 = sand.u32 1, %s1288_s19  }
  0x31   : > { %s1014_s4 = sshll.u32 %s1438_s11, 4  ;;  %s301_s17 = scalar_lea.sflag [#allocation3], %s1438_s11 }
  0x32   : > { %s1442_s20 = scalar_lea.vmem [#allocation2], %s1014_s4 }
  0x33   : > { %1267 = dma.done.wait (%p1404_p12), %s301_s17, 256  }
  0x34   : > { %1269 = vsyncadd (%p1404_p12), %s301_s17, 4294967040  ;;  %s310_s18 = sand.u32 1, %s1371_s24   ;;  %s1015_s28 = sshll.u32 %s1438_s11, 5 }
  0x35   : > { %s311_s9 = scalar_lea.sflag [#allocation6], %s310_s18  ;;  %s1450_s14 = scalar_lea.vmem [#allocation5], %s1015_s28 }
  0x36   : > { %1271 = dma.done.wait (%p1404_p12), %s311_s9, 512  }
  0x37   : > { %1273 = vsyncadd (%p1404_p12), %s311_s9, 4294966784 }
  0x38   : > { %1275 = dma.done.wait (%p68_p1), [#allocation6], 8192  }
  0x39   : > { %1277 = vsyncadd (%p68_p1), [#allocation6], 4294959104  ;;  %v1460_v0 = vld [vmem:[#allocation7 + $0x1e0] sm:$0xff]  ;;  %v1462_v1 = vld [vmem:[#allocation7 + $0x1e8] sm:$0xff]  ;;  %vm538_vm0 = vcmask 1043456   ;;  %vm534_vm1 = vcmask 31744  }
  0x3a   : > { %v1464_v2 = vld [vmem:[#allocation7 + $0x1f0] sm:$0xff]  ;;  %440 = vmatpush.msra.mxu0 %v1460_v0  ;;  %460 = vmatpush.msra.mxu1 %v1462_v1  ;;  %v1468_v3 = vld [vmem:[#allocation7 + $0x1f8] sm:$0xff]  ;;  %v1470_v4 = vld [vmem:[#allocation7 + $0x1c0] sm:$0xff]  ;;  %s1017_s26 = sshll.u32 %s1438_s11, 6  ;;  %s1041_s30 = sshll.u32 %s1296_s21, 6 }
  0x3b   : > { %v1472_v5 = vld [vmem:[#allocation7 + $0x1c8] sm:$0xff]  ;;  %480 = vmatpush.msra.mxu2 %v1464_v2  ;;  %500 = vmatpush.msra.mxu3 %v1468_v3  ;;  %v1476_v6 = vld [vmem:[#allocation7 + $0x1d0] sm:$0xff]  ;;  %v1478_v7 = vld [vmem:[#allocation7 + $0x1d8] sm:$0xff]  ;;  %s1755_s29 = scalar_lea.vmem [#allocation8], %s1017_s26  ;;  %s839_s8 = scalar_lea.hbm %s1809_s5, %s1041_s30 }
  0x3c   : > { %v1480_v8 = vld [vmem:[#allocation7 + $0x1a0] sm:$0xff]  ;;  %441 = vmatpush.msra.mxu0 %v1470_v4  ;;  %461 = vmatpush.msra.mxu1 %v1472_v5  ;;  %v1484_v9 = vld [vmem:[#allocation7 + $0x1a8] sm:$0xff]  ;;  %v1486_v10 = vld [vmem:[#allocation7 + $0x1b0] sm:$0xff]  ;;  %s841_s13 = sshll.u32 %s1755_s29, 4  ;;  %s843_s27 = sshll.u32 %s839_s8, 4  ;;  %s842_s13 = int_to_ptr.vmem [resolvable:$true] %s841_s13  ;;  %s844_s27 = int_to_ptr.hbm [resolvable:$true] %s843_s27 }
  0x3d   : > { %v1488_v11 = vld [vmem:[#allocation7 + $0x1b8] sm:$0xff]  ;;  %481 = vmatpush.msra.mxu2 %v1476_v6  ;;  %501 = vmatpush.msra.mxu3 %v1478_v7  ;;  %v1492_v12 = vld [vmem:[#allocation7 + $0x180] sm:$0xff]  ;;  %v1494_v13 = vld [vmem:[#allocation7 + $0x188] sm:$0xff]  ;;  %s824_s21 = scalar_lea.sflag [#allocation4], %s1438_s11  ;;  %s1228_s25 = sshra.s32 %s844_s27, 4  ;;  %s1229_s25 = int_to_ptr.hbm [resolvable:$true] %s1228_s25 }
  0x3e   : > { %442 = vmatpush.msra.mxu0 %v1480_v8  ;;  %462 = vmatpush.msra.mxu1 %v1484_v9  ;;  %v1498_v14 = vld [vmem:[#allocation7 + $0x190] sm:$0xff]  ;;  %v1500_v15 = vld [vmem:[#allocation7 + $0x198] sm:$0xff]  ;;  %v1504_v16 = vld [vmem:[#allocation7 + $0x160] sm:$0xff]  ;;  %s1230_s4 = scalar_lea.hbm %s1229_s25, 64  ;;  %s1234_s18 = scalar_lea.hbm %s1809_s5, 128 }
  0x3f   : > { %482 = vmatpush.msra.mxu2 %v1486_v10  ;;  %502 = vmatpush.msra.mxu3 %v1488_v11  ;;  %v1506_v17 = vld [vmem:[#allocation7 + $0x168] sm:$0xff]  ;;  %v1510_v18 = vld [vmem:[#allocation7 + $0x170] sm:$0xff]  ;;  %v1512_v19 = vld [vmem:[#allocation7 + $0x178] sm:$0xff]  ;;  %p1231_p1 = scmp.ne.s32.totalorder %s1229_s25, %s1230_s4  ;;  %p1235_p10 = scmp.lt.s32.totalorder %s1229_s25, %s1809_s5 }
  0x40   : > { %443 = vmatpush.msra.mxu0 %v1492_v12  ;;  %463 = vmatpush.msra.mxu1 %v1494_v13  ;;  %v1516_v20 = vld [vmem:[#allocation7 + $0x140] sm:$0xff]  ;;  %v1518_v21 = vld [vmem:[#allocation7 + $0x148] sm:$0xff]  ;;  %v1522_v22 = vld [vmem:[#allocation7 + $0x150] sm:$0xff]  ;;  %p1236_p11 = scmp.lt.s32.totalorder %s1234_s18, %s1230_s4 }
  0x41   : > { %483 = vmatpush.msra.mxu2 %v1498_v14  ;;  %503 = vmatpush.msra.mxu3 %v1500_v15  ;;  %v1524_v23 = vld [vmem:[#allocation7 + $0x158] sm:$0xff]  ;;  %v1528_v24 = vld [vmem:[#allocation7 + $0x120] sm:$0xff]  ;;  %v1530_v25 = vld [vmem:[#allocation7 + $0x128] sm:$0xff]  ;;  %p1232_p3 = pnand %p1231_p1, %p1411_p4 }
  0x42   : > { %444 = vmatpush.msra.mxu0 %v1504_v16  ;;  %464 = vmatpush.msra.mxu1 %v1506_v17  ;;  %v1534_v26 = vld [vmem:[#allocation7 + $0x130] sm:$0xff]  ;;  %v1536_v27 = vld [vmem:[#allocation7 + $0x138] sm:$0xff]  ;;  %v1540_v28 = vld [vmem:[#allocation7 + $0x100] sm:$0xff]  ;;  %p1237_p12 = por %p1236_p11, %p1235_p10 }
  0x43   : > { %484 = vmatpush.msra.mxu2 %v1510_v18  ;;  %504 = vmatpush.msra.mxu3 %v1512_v19  ;;  %v1542_v29 = vld [vmem:[#allocation7 + $0x108] sm:$0xff]  ;;  %v1546_v30 = vld [vmem:[#allocation7 + $0x110] sm:$0xff]  ;;  %v1548_v31 = vld [vmem:[#allocation7 + $0x118] sm:$0xff]  ;;  %p1233_p9 = pneg %p1232_p3 }
  0x44   : > { %445 = vmatpush.msra.mxu0 %v1516_v20  ;;  %465 = vmatpush.msra.mxu1 %v1518_v21  ;;  %v1552_v32 = vld [vmem:[#allocation7 + $0xe0] sm:$0xff]  ;;  %v1554_v33 = vld [vmem:[#allocation7 + $0xe8] sm:$0xff]  ;;  %v1558_v34 = vld [vmem:[#allocation7 + $0xf0] sm:$0xff] }
  0x45   : > { %485 = vmatpush.msra.mxu2 %v1522_v22  ;;  %505 = vmatpush.msra.mxu3 %v1524_v23  ;;  %v1560_v35 = vld [vmem:[#allocation7 + $0xf8] sm:$0xff]  ;;  %v1564_v36 = vld [vmem:[#allocation7 + $0xc0] sm:$0xff]  ;;  %v1566_v37 = vld [vmem:[#allocation7 + $0xc8] sm:$0xff]  ;;  %p1238_p13 = pnand %p1237_p12, %p1233_p9 }
  0x46   : > { %446 = vmatpush.msra.mxu0 %v1528_v24  ;;  %466 = vmatpush.msra.mxu1 %v1530_v25  ;;  %v1570_v38 = vld [vmem:[#allocation7 + $0xd0] sm:$0xff]  ;;  %v1572_v39 = vld [vmem:[#allocation7 + $0xd8] sm:$0xff]  ;;  %v1576_v40 = vld [vmem:[#allocation7 + $0xa0] sm:$0xff] }
  0x47   : > { %486 = vmatpush.msra.mxu2 %v1534_v26  ;;  %506 = vmatpush.msra.mxu3 %v1536_v27  ;;  %v1578_v41 = vld [vmem:[#allocation7 + $0xa8] sm:$0xff]  ;;  %v1582_v42 = vld [vmem:[#allocation7 + $0xb0] sm:$0xff]  ;;  %v1584_v43 = vld [vmem:[#allocation7 + $0xb8] sm:$0xff] }
  0x48   : > { %447 = vmatpush.msra.mxu0 %v1540_v28  ;;  %467 = vmatpush.msra.mxu1 %v1542_v29  ;;  %v1588_v44 = vld [vmem:[#allocation7 + $0x80] sm:$0xff]  ;;  %v1590_v45 = vld [vmem:[#allocation7 + $0x88] sm:$0xff]  ;;  %v1594_v46 = vld [vmem:[#allocation7 + $0x90] sm:$0xff] }
  0x49   : > { %487 = vmatpush.msra.mxu2 %v1546_v30  ;;  %507 = vmatpush.msra.mxu3 %v1548_v31  ;;  %v1596_v47 = vld [vmem:[#allocation7 + $0x98] sm:$0xff]  ;;  %v437_v48 = vld [vmem:[%s1450_s14] sm:$0xff]  ;;  %v1603_v50 = vld [vmem:[#allocation7 + $0x68] sm:$0xff] }
  0x4a   : > { %448 = vmatpush.msra.mxu0 %v1552_v32  ;;  %468 = vmatpush.msra.mxu1 %v1554_v33  ;;  %v1601_v49 = vld [vmem:[#allocation7 + $0x60] sm:$0xff]  ;;  %1836 = vst [vmem:[#allocation19_spill] sm:$0xff] %v1603_v50  ;;  %v438_v51 = vld [vmem:[%s1450_s14 + $0x8] sm:$0xff]  ;;  %v1608_v52 = vld [vmem:[#allocation7 + $0x70] sm:$0xff] }
  0x4b   : > { %488 = vmatpush.msra.mxu2 %v1558_v34  ;;  %508 = vmatpush.msra.mxu3 %v1560_v35  ;;  %527 = vst [vmem:[#allocation1] ss:$2 sm:$0xff] %v437_v48  ;;  %v1610_v53 = vld [vmem:[#allocation7 + $0x78] sm:$0xff]  ;;  %v1614_v54 = vld [vmem:[#allocation7 + $0x40] sm:$0xff]  ;;  %v1616_v55 = vld [vmem:[#allocation7 + $0x48] sm:$0xff] }
  0x4c   : > { %449 = vmatpush.msra.mxu0 %v1564_v36  ;;  %469 = vmatpush.msra.mxu1 %v1566_v37  ;;  %1837 = vst [vmem:[#allocation20_spill] sm:$0xff] %v1608_v52  ;;  %v1620_v56 = vld [vmem:[#allocation7 + $0x50] sm:$0xff]  ;;  %v1622_v57 = vld [vmem:[#allocation7 + $0x58] sm:$0xff]  ;;  %v1624_v58 = vld [vmem:[#allocation7 + $0x20] sm:$0xff] }
  0x4d   : > { %489 = vmatpush.msra.mxu2 %v1570_v38  ;;  %509 = vmatpush.msra.mxu3 %v1572_v39  ;;  %1838 = vst [vmem:[#allocation21_spill] sm:$0xff] %v1610_v53  ;;  %v1628_v59 = vld [vmem:[#allocation7 + $0x28] sm:$0xff]  ;;  %v1630_v60 = vld [vmem:[#allocation7 + $0x30] sm:$0xff]  ;;  %v1632_v61 = vld [vmem:[#allocation7 + $0x38] sm:$0xff] }
  0x4e   : > { %450 = vmatpush.msra.mxu0 %v1576_v40  ;;  %470 = vmatpush.msra.mxu1 %v1578_v41  ;;  %529 = vst [vmem:[#allocation1 + $0x10] ss:$2 sm:$0xff] %v438_v51  ;;  %v1636_v62 = vld [vmem:[#allocation7] sm:$0xff]  ;;  %v1638_v63 = vld [vmem:[#allocation7 + $0x8] sm:$0xff]  ;;  %v635_v48 = vld [vmem:[%s1450_s14 + $0x10] sm:$0xff] }
  0x4f   : > { %490 = vmatpush.msra.mxu2 %v1582_v42  ;;  %510 = vmatpush.msra.mxu3 %v1584_v43  ;;  %1839 = vst [vmem:[#allocation22_spill] sm:$0xff] %v1614_v54  ;;  %v1643_v51 = vld [vmem:[#allocation7 + $0x10] sm:$0xff] }
  0x50   : > { %451 = vmatpush.msra.mxu0 %v1588_v44  ;;  %471 = vmatpush.msra.mxu1 %v1590_v45  ;;  %1840 = vst [vmem:[#allocation23_spill] sm:$0xff] %v1616_v55 }
  0x51   : > { %491 = vmatpush.msra.mxu2 %v1594_v46  ;;  %511 = vmatpush.msra.mxu3 %v1596_v47  ;;  %1841 = vst [vmem:[#allocation24_spill] sm:$0xff] %v1620_v56 }
  0x52   : > { %452 = vmatpush.msra.mxu0 %v1601_v49  ;;  %472 = vmatpush.msra.mxu1 %v1603_v50  ;;  %1842 = vst [vmem:[#allocation25_spill] sm:$0xff] %v1622_v57  ;;  %v439_v50 = vld [vmem:[%s1442_s20] sm:$0xff] }
  0x53   : > { %492 = vmatpush.msra.mxu2 %v1608_v52  ;;  %512 = vmatpush.msra.mxu3 %v1610_v53  ;;  %v1645_v53 = vld [vmem:[#allocation7 + $0x18] sm:$0xff] }
  0x54   : > { %453 = vmatpush.msra.mxu0 %v1614_v54  ;;  %473 = vmatpush.msra.mxu1 %v1616_v55  ;;  %v636_v52 = vld [vmem:[%s1450_s14 + $0x18] sm:$0xff]  ;;  %v531_v55 = vld.sshfl [vmem:[#allocation1 + $0x8] sm:$0xff pattern:$0x75316420] }
  0x55   : > { %493 = vmatpush.msra.mxu2 %v1620_v56  ;;  %513 = vmatpush.msra.mxu3 %v1622_v57  ;;  %v530_v54 = vld.sshfl [vmem:[#allocation1] sm:$0xff pattern:$0x75316420]  ;;  %v532_v57 = vld.sshfl [vmem:[#allocation1 + $0x10] sm:$0xff pattern:$0x75316420] }
  0x56   : > { %454 = vmatpush.msra.mxu0 %v1624_v58  ;;  %474 = vmatpush.msra.mxu1 %v1628_v59  ;;  %720 = vst [vmem:[#allocation1] ss:$2 sm:$0xff] %v635_v48  ;;  %v533_v56 = vld.sshfl [vmem:[#allocation1 + $0x18] sm:$0xff pattern:$0x75316420] }
  0x57   : > { %494 = vmatpush.msra.mxu2 %v1630_v60  ;;  %514 = vmatpush.msra.mxu3 %v1632_v61  ;;  %722 = vst [vmem:[#allocation1 + $0x10] ss:$2 sm:$0xff] %v636_v52 }
  0x58   : > { %455 = vmatpush.msra.mxu0 %v1636_v62  ;;  %475 = vmatpush.msra.mxu1 %v1638_v63 }
  0x59   : > { %495 = vmatpush.msra.mxu2 %v1643_v51  ;;  %515 = vmatpush.msra.mxu3 %v1645_v53 }
  0x5a   : > { %456 = vmatmul.f32.vlgmr.msra.gmra.mxu0 %v439_v50  ;;  %476 = vmatmul.f32.vlgmr.msra.gmra.mxu1 %v439_v50 }
  0x5b   : > { %496 = vmatmul.f32.vlgmr.msra.gmra.mxu2 %v439_v50  ;;  %516 = vmatmul.f32.vlgmr.msra.gmra.mxu3 %v439_v50 }
  0x5c   : > { %1018 = vmatpush.msk.msrb.mxu0 %vm538_vm0, %v530_v54  ;;  %1020 = vmatpush.msk.msrb.mxu1 %vm538_vm0, %v531_v55 }
  0x5d   : > { %1022 = vmatpush.msk.msrb.mxu2 %vm538_vm0, %v532_v57  ;;  %1024 = vmatpush.msk.msrb.mxu3 %vm538_vm0, %v533_v56 }
  0x5e   : > { %638 = vmatpush.msra.mxu0 %v1460_v0  ;;  %658 = vmatpush.msra.mxu1 %v1462_v1  ;;  %v1676_v0 = vld [vmem:[%s1806_s2] sm:$0xff] }
  0x5f   : > { %678 = vmatpush.msra.mxu2 %v1464_v2  ;;  %698 = vmatpush.msra.mxu3 %v1468_v3  ;;  %v372_v1 = vld [vmem:[%s1807_s3] sm:$0xff]  ;;  %v1309_v2 = vmov 0   ;;  %v1843_v3 = vld [vmem:[#allocation19_spill] sm:$0xff] }
  0x60   : > { %639 = vmatpush.msra.mxu0 %v1470_v4  ;;  %659 = vmatpush.msra.mxu1 %v1472_v5  ;;  %v1844_v4 = vld [vmem:[#allocation20_spill] sm:$0xff]  ;;  %v1845_v5 = vld [vmem:[#allocation21_spill] sm:$0xff] }
  0x61   : > { %679 = vmatpush.msra.mxu2 %v1476_v6  ;;  %699 = vmatpush.msra.mxu3 %v1478_v7  ;;  %v1846_v6 = vld [vmem:[#allocation22_spill] sm:$0xff]  ;;  %v1847_v7 = vld [vmem:[#allocation23_spill] sm:$0xff] }
  0x62   : > { %640 = vmatpush.msra.mxu0 %v1480_v8  ;;  %660 = vmatpush.msra.mxu1 %v1484_v9  ;;  %v1848_v8 = vld [vmem:[#allocation24_spill] sm:$0xff]  ;;  %v1849_v9 = vld [vmem:[#allocation25_spill] sm:$0xff] }
  0x63   : > { %680 = vmatpush.msra.mxu2 %v1486_v10  ;;  %700 = vmatpush.msra.mxu3 %v1488_v11  ;;  %v637_v10 = vld [vmem:[%s1442_s20 + $0x8] sm:$0xff] }
  0x64   : > { %641 = vmatpush.msra.mxu0 %v1492_v12  ;;  %661 = vmatpush.msra.mxu1 %v1494_v13  ;;  %v725_v11 = vld.sshfl [vmem:[#allocation1 + $0x10] sm:$0xff pattern:$0x75316420]  ;;  %v726_v12 = vld.sshfl [vmem:[#allocation1 + $0x18] sm:$0xff pattern:$0x75316420] }
  0x65   : > { %681 = vmatpush.msra.mxu2 %v1498_v14  ;;  %701 = vmatpush.msra.mxu3 %v1500_v15  ;;  %v723_v13 = vld.sshfl [vmem:[#allocation1] sm:$0xff pattern:$0x75316420]  ;;  %v724_v14 = vld.sshfl [vmem:[#allocation1 + $0x8] sm:$0xff pattern:$0x75316420] }
  0x66   : > { %1019 = vmatmul.msk.f32.vlgmr.msrb.gmra.mxu0 %vm534_vm1, %v1676_v0  ;;  %1021 = vmatmul.msk.f32.vlgmr.msrb.gmra.mxu1 %vm534_vm1, %v1676_v0 }
  0x67   : > { %1023 = vmatmul.msk.f32.vlgmr.msrb.gmra.mxu2 %vm534_vm1, %v1676_v0  ;;  %1025 = vmatmul.msk.f32.vlgmr.msrb.gmra.mxu3 %vm534_vm1, %v1676_v0 }
  0x68   : > { %642 = vmatpush.msra.mxu0 %v1504_v16  ;;  %662 = vmatpush.msra.mxu1 %v1506_v17 }
  0x69   : > { %682 = vmatpush.msra.mxu2 %v1510_v18  ;;  %702 = vmatpush.msra.mxu3 %v1512_v19 }
  0x6a   : > { %643 = vmatpush.msra.mxu0 %v1516_v20  ;;  %663 = vmatpush.msra.mxu1 %v1518_v21 }
  0x6b   : > { %683 = vmatpush.msra.mxu2 %v1522_v22  ;;  %703 = vmatpush.msra.mxu3 %v1524_v23 }
  0x6c   : > { %644 = vmatpush.msra.mxu0 %v1528_v24  ;;  %664 = vmatpush.msra.mxu1 %v1530_v25 }
  0x6d   : > { %684 = vmatpush.msra.mxu2 %v1534_v26  ;;  %704 = vmatpush.msra.mxu3 %v1536_v27 }
  0x6e   : > { %645 = vmatpush.msra.mxu0 %v1540_v28  ;;  %665 = vmatpush.msra.mxu1 %v1542_v29 }
  0x6f   : > { %685 = vmatpush.msra.mxu2 %v1546_v30  ;;  %705 = vmatpush.msra.mxu3 %v1548_v31 }
  0x70   : > { %646 = vmatpush.msra.mxu0 %v1552_v32  ;;  %666 = vmatpush.msra.mxu1 %v1554_v33 }
  0x71   : > { %686 = vmatpush.msra.mxu2 %v1558_v34  ;;  %706 = vmatpush.msra.mxu3 %v1560_v35 }
  0x72   : > { %1123 = vset.pattern.permute.xlu0 %v1309_v2  ;;  %647 = vmatpush.msra.mxu0 %v1564_v36 }
  0x73   : > { %667 = vmatpush.msra.mxu1 %v1566_v37  ;;  %687 = vmatpush.msra.mxu2 %v1570_v38 }
  0x74   : > { %707 = vmatpush.msra.mxu3 %v1572_v39  ;;  %522 = vperm.xlu0 %1123, %v372_v1  }
  0x75   : > { %648 = vmatpush.msra.mxu0 %v1576_v40  ;;  %668 = vmatpush.msra.mxu1 %v1578_v41 }
  0x76   : > { %688 = vmatpush.msra.mxu2 %v1582_v42  ;;  %708 = vmatpush.msra.mxu3 %v1584_v43 }
  0x77   : > { %649 = vmatpush.msra.mxu0 %v1588_v44  ;;  %669 = vmatpush.msra.mxu1 %v1590_v45 }
  0x78   : > { %689 = vmatpush.msra.mxu2 %v1594_v46  ;;  %709 = vmatpush.msra.mxu3 %v1596_v47 }
  0x79   : > { %650 = vmatpush.msra.mxu0 %v1601_v49  ;;  %670 = vmatpush.msra.mxu1 %v1843_v3 }
  0x7a   : > { %690 = vmatpush.msra.mxu2 %v1844_v4  ;;  %710 = vmatpush.msra.mxu3 %v1845_v5 }
  0x7b   : > { %651 = vmatpush.msra.mxu0 %v1846_v6  ;;  %671 = vmatpush.msra.mxu1 %v1847_v7 }
  0x7c   : > { %691 = vmatpush.msra.mxu2 %v1848_v8  ;;  %711 = vmatpush.msra.mxu3 %v1849_v9 }
  0x7d   : > { %652 = vmatpush.msra.mxu0 %v1624_v58  ;;  %672 = vmatpush.msra.mxu1 %v1628_v59 }
  0x7e   : > { %692 = vmatpush.msra.mxu2 %v1630_v60  ;;  %712 = vmatpush.msra.mxu3 %v1632_v61 }
  0x7f   : > { %653 = vmatpush.msra.mxu0 %v1636_v62  ;;  %673 = vmatpush.msra.mxu1 %v1638_v63 }
  0x80   : > { %693 = vmatpush.msra.mxu2 %v1643_v51  ;;  %713 = vmatpush.msra.mxu3 %v1645_v53 }
  0x81   : > { %654 = vmatmul.f32.vlgmr.msra.gmra.mxu0 %v637_v10  ;;  %674 = vmatmul.f32.vlgmr.msra.gmra.mxu1 %v637_v10 }
  0x82   : > { %694 = vmatmul.f32.vlgmr.msra.gmra.mxu2 %v637_v10  ;;  %714 = vmatmul.f32.vlgmr.msra.gmra.mxu3 %v637_v10 }
  0x83   : > { %1030 = vmatpush.msk.msrb.mxu2 %vm538_vm0, %v725_v11  ;;  %1032 = vmatpush.msk.msrb.mxu3 %vm538_vm0, %v726_v12 }
  0x84   : > { %1026 = vmatpush.msk.msrb.mxu0 %vm538_vm0, %v723_v13  ;;  %1028 = vmatpush.msk.msrb.mxu1 %vm538_vm0, %v724_v14 }
  0x89   : > { %1027 = vmatmul.msk.f32.vlgmr.msrb.gmra.mxu0 %vm534_vm1, %v1676_v0  ;;  %1029 = vmatmul.msk.f32.vlgmr.msrb.gmra.mxu1 %vm534_vm1, %v1676_v0 }
  0x8a   : > { %1031 = vmatmul.msk.f32.vlgmr.msrb.gmra.mxu2 %vm534_vm1, %v1676_v0  ;;  %1033 = vmatmul.msk.f32.vlgmr.msrb.gmra.mxu3 %vm534_vm1, %v1676_v0 }
  0xd7   : > { %v457_v15 = vpop.f32.mrf.mxu0  ;;  %v477_v16 = vpop.f32.mrf.mxu1 }
  0xde   : > { %v497_v17 = vpop.f32.mrf.mxu2  ;;  %v517_v18 = vpop.f32.mrf.mxu3 }
  0xe3   : > { %v564_v19 = vpop.f32.mrf.mxu0  ;;  %v584_v20 = vpop.f32.mrf.mxu1 }
  0xe6   : > { %v523_v21 = vpop.permute.xlu0 %522 }
  0xe7   : > { %v565_v22 = vadd.f32 %v564_v19, %v523_v21  ;;  %v585_v23 = vadd.f32 %v584_v20, %v523_v21 }
  0xe9   : > { %v627_v24 = vadd.f32 %v565_v22, %v457_v15  ;;  %v628_v25 = vadd.f32 %v585_v23, %v477_v16 }
  0xea   : > { %v604_v26 = vpop.f32.mrf.mxu2  ;;  %v624_v27 = vpop.f32.mrf.mxu3 }
  0xeb   : > { %631 = vst [vmem:[%s1755_s29] sm:$0xff] %v627_v24  ;;  %v605_v28 = vadd.f32 %v604_v26, %v523_v21  ;;  %v625_v29 = vadd.f32 %v624_v27, %v523_v21 }
  0xec   : > { %632 = vst [vmem:[%s1755_s29 + $0x8] sm:$0xff] %v628_v25 }
  0xed   : > { %v629_v30 = vadd.f32 %v605_v28, %v497_v17  ;;  %v630_v31 = vadd.f32 %v625_v29, %v517_v18 }
  0xef   : > { %633 = vst [vmem:[%s1755_s29 + $0x10] sm:$0xff] %v629_v30 }
  0xf0   : > { %634 = vst [vmem:[%s1755_s29 + $0x18] sm:$0xff] %v630_v31 }
  0xfe   : > { %v655_v32 = vpop.f32.mrf.mxu0  ;;  %v675_v33 = vpop.f32.mrf.mxu1 }
 0x105   : > { %v695_v34 = vpop.f32.mrf.mxu2  ;;  %v715_v35 = vpop.f32.mrf.mxu3 }
 0x106   : > { %v752_v36 = vpop.f32.mrf.mxu0  ;;  %v772_v37 = vpop.f32.mrf.mxu1 }
 0x107   : > { %v753_v38 = vadd.f32 %v752_v36, %v523_v21  ;;  %v773_v39 = vadd.f32 %v772_v37, %v523_v21 }
 0x109   : > { %v815_v40 = vadd.f32 %v753_v38, %v655_v32  ;;  %v816_v41 = vadd.f32 %v773_v39, %v675_v33 }
 0x10b   : > { %819 = vst [vmem:[%s1755_s29 + $0x20] sm:$0xff] %v815_v40 }
 0x10c   : > { %820 = vst [vmem:[%s1755_s29 + $0x28] sm:$0xff] %v816_v41 }
 0x10d   : > { %v792_v42 = vpop.f32.mrf.mxu2  ;;  %v812_v43 = vpop.f32.mrf.mxu3 }
 0x10e   : > { %v793_v44 = vadd.f32 %v792_v42, %v523_v21  ;;  %v813_v45 = vadd.f32 %v812_v43, %v523_v21 }
 0x110   : > { %v817_v46 = vadd.f32 %v793_v44, %v695_v34  ;;  %v818_v47 = vadd.f32 %v813_v45, %v715_v35 }
 0x112   : > { %821 = vst [vmem:[%s1755_s29 + $0x30] sm:$0xff] %v817_v46 }
 0x113   : > { %822 = vst [vmem:[%s1755_s29 + $0x38] sm:$0xff] %v818_v47 }
 0x114   : > { %1241 = shalt.err (!%p1238_p13)
}
 0x115   : > { %1050 = dma.vmem_to_hbm [thread:$0]  (%p1411_p4), %s842_s13, 1024, %s844_s27, %s824_s21  }
 0x116 PF: > { %s1851_s11 = sld [smem:[#allocation13_spill]]  ;;  %p1064_p0 = pnand %p1006_p6, %p1419_p7 }
 0x118   : > { %p1065_p2 = pneg %p1064_p0 }
 0x11c   : > { %s855_s24 = sand.u32 1, %s1851_s11  }
 0x11d   : > { %s856_s12 = scalar_lea.sflag [#allocation4], %s855_s24 }
 0x11e   : > { %1279 = dma.done.wait (%p1065_p2), %s856_s12, 1024  }
 0x11f   : > { %1281 = vsyncadd (%p1065_p2), %s856_s12, 4294966272  ;;  %s24_s23 = sadd.s32 1, %s1304_s23   ;;  %s1853_s15 = sld [smem:[#allocation14_spill]] }
 0x120   : > { %p21_p5 = scmp.ge.s32.totalorder %s24_s23, 4   ;;  %s1854_s20 = sld [smem:[#allocation17_spill]] }
 0x121   : > { %s1855_s16 = sld [smem:[#allocation15_spill]]  ;;  %s1856_s18 = smov %s1288_s19 }
 0x122   : > { %s1858_s21 = smov %s1300_s22 }
 0x123   :  { %23 = sbr.rel (!%p21_p5) target bundleno = 10 (0xa), region = 110 }
 0x125   : > { %s1857_s19 = smov %s1853_s15 }
 0x127   : > { %s1859_s22 = smov %s1855_s16 }
 0x128   :  { %862 = vsyncpa [#allocation3], 1 }
 0x129   :  { %864 = vsyncpa [#allocation3 + $0x1], 1 }
 0x12a   :  { %865 = vsyncpa [#allocation6], 1 }
 0x12b   :  { %867 = vsyncpa [#allocation6 + $0x1], 1 }
 0x12c   :  { %868 = vsyncpa [#allocation4], 1 }
 0x12d   :  { %870 = vsyncpa [#allocation4 + $0x1], 1 }

</bundles_post_ra>
